<compile_context>
chip_gen: v5e
topology: v5e:2x2
jax: 0.10.0
libtpu: 0.0.40
codegen_flags: <defaults>
</compile_context>

<pallas_src>
import jax
import jax.numpy as jnp
from jax.experimental import pallas as pl
from jax.experimental.pallas import tpu as pltpu


def _noise_injection_kernel(w_ref, img_ref, noise_ref, out_ref):
    # w_ref:     SMEM, shape (1,)
    # img_ref:   VMEM block (1, TC, HW)
    # noise_ref: VMEM block (1, 1, HW)   (resident across channel tiles)
    # out_ref:   VMEM block (1, TC, HW)
    wn = w_ref[0] * noise_ref[...]                    # (1, 1, HW) weighted noise
    out_ref[...] = (img_ref[...] + wn).astype(out_ref.dtype)


def _channels_per_tile(C, HW, itemsize, target_tile_bytes=1 << 20):
    """Pick a channel-tile size so one (TC, HW) image tile is ~target bytes.

    Returns either the full C (legal for any C) or a multiple of 8 so the
    second-to-last block dim always satisfies the (8,128) constraint.
    """
    row_bytes = HW * itemsize
    tc = max(1, target_tile_bytes // row_bytes)
    if tc >= C:
        return C
    tc = max(8, (tc // 8) * 8)          # keep sublane dim a multiple of 8
    return min(tc, C)


def noise_injection(image, noise, weight):
    """image: (B, C, H, W), noise: (B, 1, H, W), weight: shape-(1,) array."""
    B, C, H, W = image.shape
    assert noise.shape == (B, 1, H, W)
    HW = H * W

    # Lane-dense flattening: last dim becomes H*W (full array dim, so always a
    # legal block last-dim; for typical GAN spatial sizes it is a multiple of
    # 128, giving full-vreg loads and unmasked stores).
    img2 = image.reshape(B, C, HW)
    noise2 = noise.reshape(B, 1, HW)

    itemsize = jnp.dtype(image.dtype).itemsize
    tc = _channels_per_tile(C, HW, itemsize)
    n_ct = pl.cdiv(C, tc)

    out = pl.pallas_call(
        _noise_injection_kernel,
        out_shape=jax.ShapeDtypeStruct((B, C, HW), image.dtype),
        grid=(B, n_ct),
        in_specs=[
            # scalar weight, whole array in SMEM
            pl.BlockSpec(memory_space=pltpu.MemorySpace.SMEM),
            # channel tile of one batch element
            pl.BlockSpec((1, tc, HW), lambda b, c: (b, c, 0)),
            # matching noise slab; index_map ignores the channel-tile index so
            # the block stays resident (no re-DMA) across channel tiles.
            pl.BlockSpec((1, 1, HW), lambda b, c: (b, 0, 0)),
        ],
        out_specs=pl.BlockSpec((1, tc, HW), lambda b, c: (b, c, 0)),
        compiler_params=pltpu.CompilerParams(
            dimension_semantics=("parallel", "parallel")
        ),
        # NOTE: input_output_aliases={1: 0} could be added if the caller does
        # not need the pre-injection image (in-place semantics).
    )(weight, img2, noise2)

    return out.reshape(B, C, H, W)


if __name__ == "__main__":
    key = jax.random.PRNGKey(0)
    k_img, k_noise = jax.random.split(key)

    B, C, H, W = 2, 4, 16, 16
    image = jax.random.normal(k_img, (B, C, H, W), dtype=jnp.float32)
    # PyTorch forward draws noise ~ N(0,1) of shape (B, 1, H, W) when not given;
    # we generate it deterministically here and pass it explicitly.
    noise = jax.random.normal(k_noise, (B, 1, H, W), dtype=jnp.float32)

    # Parameter init per module __init__: self.weight = nn.Parameter(torch.zeros(1))
    weight = jnp.zeros((1,), dtype=jnp.float32)

    out = noise_injection(image, noise, weight)
    jax.block_until_ready(out)

    # Correctness check against pure-JAX reference (zero weight -> identity).
    ref = image + weight[0] * noise
    assert jnp.allclose(out, ref, atol=1e-6), "mismatch with reference (w=0)"

    # Also sanity-check a nonzero weight to exercise the broadcast + FMA path.
    weight2 = jnp.array([0.5], dtype=jnp.float32)
    out2 = noise_injection(image, noise, weight2)
    jax.block_until_ready(out2)
    ref2 = image + weight2[0] * noise
    assert jnp.allclose(out2, ref2, atol=1e-6), "mismatch with reference (w=0.5)"

    print("KERNEL_OK")
</pallas_src>

<mosaic_0001>
module attributes {stable_mosaic.version = 11 : i64} {
  func.func @_noise_injection_kernel(%arg0: i32, %arg1: i32, %arg2: memref<1xf32, #tpu.memory_space<smem>>, %arg3: memref<1x4x256xf32, #tpu.memory_space<vmem>>, %arg4: memref<1x1x256xf32, #tpu.memory_space<vmem>>, %arg5: memref<1x4x256xf32, #tpu.memory_space<vmem>>) attributes {dimension_semantics = [#tpu.dimension_semantics<parallel>, #tpu.dimension_semantics<parallel>], iteration_bounds = array<i64: 2, 1>, scalar_prefetch = 0 : i64, scratch_operands = 0 : i64, tpu.core_type = #tpu.core_type<tc>, window_params = [{transform_indices = @transform_0, window_bounds = array<i64: 1>}, {transform_indices = @transform_1, window_bounds = array<i64: 1, 4, 256>}, {transform_indices = @transform_2, window_bounds = array<i64: 1, 1, 256>}, {transform_indices = @transform_3, window_bounds = array<i64: 1, 4, 256>}]} {
    %c0 = arith.constant 0 : index
    %0 = memref.load %arg2[%c0] : memref<1xf32, #tpu.memory_space<smem>>
    %c0_0 = arith.constant 0 : index
    %c0_1 = arith.constant 0 : index
    %c0_2 = arith.constant 0 : index
    %1 = vector.load %arg4[%c0_0, %c0_1, %c0_2] : memref<1x1x256xf32, #tpu.memory_space<vmem>>, vector<1x1x256xf32>
    %2 = vector.broadcast %0 : f32 to vector<1x1x256xf32>
    %3 = arith.mulf %2, %1 : vector<1x1x256xf32>
    %c0_3 = arith.constant 0 : index
    %c0_4 = arith.constant 0 : index
    %c0_5 = arith.constant 0 : index
    %4 = vector.load %arg3[%c0_3, %c0_4, %c0_5] : memref<1x4x256xf32, #tpu.memory_space<vmem>>, vector<1x4x256xf32>
    %5 = vector.broadcast %3 : vector<1x1x256xf32> to vector<1x4x256xf32>
    %6 = arith.addf %4, %5 : vector<1x4x256xf32>
    %c0_6 = arith.constant 0 : index
    %c0_7 = arith.constant 0 : index
    %c0_8 = arith.constant 0 : index
    %7 = vector.load %arg5[%c0_6, %c0_7, %c0_8] : memref<1x4x256xf32, #tpu.memory_space<vmem>>, vector<1x4x256xf32>
    tpu.vector_store %arg5[%c0_6, %c0_7, %c0_8], %6 {strides = array<i32>} : memref<1x4x256xf32, #tpu.memory_space<vmem>>, vector<1x4x256xf32>,
    return
  }
  func.func @transform_0(%arg0: i32, %arg1: i32) -> i32 {
    %c0_i32 = arith.constant 0 : i32
    %c0_i32_0 = arith.constant 0 : i32
    return %c0_i32 : i32
  }
  func.func @transform_1(%arg0: i32, %arg1: i32) -> (i32, i32, i32) {
    %c0_i32 = arith.constant 0 : i32
    %c0_i32_0 = arith.constant 0 : i32
    return %arg0, %arg1, %c0_i32 : i32, i32, i32
  }
  func.func @transform_2(%arg0: i32, %arg1: i32) -> (i32, i32, i32) {
    %c0_i32 = arith.constant 0 : i32
    %c0_i32_0 = arith.constant 0 : i32
    %c0_i32_1 = arith.constant 0 : i32
    return %arg0, %c0_i32, %c0_i32_0 : i32, i32, i32
  }
  func.func @transform_3(%arg0: i32, %arg1: i32) -> (i32, i32, i32) {
    %c0_i32 = arith.constant 0 : i32
    %c0_i32_0 = arith.constant 0 : i32
    return %arg0, %arg1, %c0_i32 : i32, i32, i32
  }
}

</mosaic_0001>

<bundles_post_ra>
// kernel: tpu_custom_call.1
= control target key start
LH: loop header
LB: loop body
LE: loop exit
PB: predicated region body
PF: predicated region fallthrough
CT: control target
= control target key end

     0   :  { %s783_s0 = inlined_call_operand.<no memory space> [shape: f32[1], index: 0, kind: input, shape index: {}]   ;;  %s784_s1 = inlined_call_operand.hbm [shape: f32[2,4,256], index: 1, kind: input, shape index: {}]   ;;  %s785_s2 = inlined_call_operand.hbm [shape: f32[2,1,256], index: 2, kind: input, shape index: {}]   ;;  %s786_s3 = inlined_call_operand.hbm [shape: f32[2,4,256], index: 3, kind: output, shape index: {}]  }
   0x1   :  { %8 = sst [smem:[#allocation2]] %s783_s0 }
   0x2   :  { %9 = vsyncpa [#allocation4], 0 }
   0x3   :  { %11 = vsyncpa [#allocation4 + $0x1], 0 }
   0x4   :  { %12 = vsyncpa [#allocation7], 0 }
   0x5   :  { %14 = vsyncpa [#allocation7 + $0x1], 0 }
   0x6   :  { %15 = vsyncpa [#allocation5], 0 }
   0x7   :  { %17 = vsyncpa [#allocation5 + $0x1], 0  ;;  %s645_s14 = smov 0   ;;  %s647_s15 = smov 0  }
   0x8   :  { %s649_s16 = smov 0   ;;  %s651_s17 = smov 0  }
   0x9   :  { %s653_s18 = smov 0   ;;  %s655_s19 = smov 0  }
   0xa LB: > { %s387_s0 = sadd.s32 4294967295, %s620_s19   ;;  %s388_s20 = sadd.s32 4294967294, %s620_s19   ;;  %s620_s19 = sphi %s655_s19, %s23_s19   ;;  %s616_s18 = sphi %s653_s18, %s796_s18   ;;  %s612_s17 = sphi %s651_s17, %s795_s17   ;;  %s608_s16 = sphi %s649_s16, %s794_s16   ;;  %s604_s15 = sphi %s647_s15, %s793_s15   ;;  %s600_s14 = sphi %s645_s14, %s792_s14  }
   0xb   : > { %s35_s21 = sadd.s32 1, %s616_s18  ;;  %s65_s22 = sadd.s32 1, %s608_s16 }
   0xc   : > { %p37_p0 = scmp.ge.s32.totalorder %s35_s21, 2  ;;  %p72_p1 = scmp.ne.s32.totalorder %s608_s16, %s604_s15 }
   0xd   : > { %p73_p2 = scmp.eq.s32.totalorder %s620_s19, 0  ;;  %p78_p3 = scmp.ne.s32.totalorder %s604_s15, %s600_s14 }
   0xe   : > { %s798_s21 = smov (%p37_p0, %s35_s21), 0  ;;  %p79_p5 = scmp.eq.s32.totalorder %s387_s0, 0 }
   0xf   : > { %p686_p4 = por %p73_p2, %p72_p1  ;;  %s60_s24 = ssub.s32 %s616_s18, %s798_s21 }
  0x10   : > { %p130_p6 = scmp.eq.s32.totalorder %s387_s0, 1  ;;  %p63_p7 = scmp.eq.s32.totalorder %s60_s24, 0 }
  0x11   : > { %p692_p8 = por %p79_p5, %p78_p3  ;;  %p136_p10 = scmp.eq.s32.totalorder %s388_s20, 1 }
  0x12   : > { %p696_p9 = por %p130_p6, %p72_p1  ;;  %p390_p12 = scmp.ge.s32.totalorder %s620_s19, 2 }
  0x13   : > { %s701_s27 = scalar_select %p63_p7, %s608_s16, %s65_s22  }
  0x14   : > { %p703_p11 = por %p136_p10, %p78_p3  ;;  %p424_p13 = scmp.lt.s32.totalorder %s620_s19, 2 }
  0x15   : > { %s159_s29 = sand.u32 1, %s608_s16   ;;  %s405_s4 = sshll.u32 %s616_s18, 3 }
  0x16   : > { %s391_s30 = sshll.u32 %s159_s29, 3  ;;  %s170_s7 = scalar_lea.hbm %s784_s1, %s405_s4 }
  0x17   : > { %s163_s8 = scalar_lea.vmem [#allocation3], %s391_s30  ;;  %s172_s10 = sshll.u32 %s170_s7, 4  ;;  %s173_s10 = int_to_ptr.hbm [resolvable:$true] %s172_s10 }
  0x18   : > { %s174_s9 = sshll.u32 %s163_s8, 4  ;;  %p716_p0 = pnand %p424_p13, %p686_p4  ;;  %s175_s9 = int_to_ptr.vmem [resolvable:$true] %s174_s9 }
  0x19   : > { %p396_p1 = scmp.ge.s32.totalorder %s620_s19, 1  ;;  %p198_p2 = scmp.lt.s32.totalorder %s620_s19, 3 }
  0x1a   : > { %s160_s12 = scalar_lea.sflag [#allocation4], %s159_s29  ;;  %s394_s13 = sshll.u32 %s159_s29, 1 }
  0x1b   : > { %416 = dma.hbm_to_vmem [thread:$0]  (!%p716_p0), %s173_s10, 128, %s175_s9, %s160_s12  }
  0x1c   : > { %p199_p3 = pnand %p396_p1, %p198_p2  ;;  %s395_s0 = sshll.u32 %s616_s18, 1 }
  0x1d   : > { %s189_s24 = scalar_lea.hbm %s785_s2, %s395_s0  ;;  %s185_s30 = scalar_lea.vmem [#allocation6], %s394_s13 }
  0x1e   : > { %s193_s23 = sshll.u32 %s185_s30, 4  ;;  %s191_s4 = sshll.u32 %s189_s24, 4  ;;  %s194_s23 = int_to_ptr.vmem [resolvable:$true] %s193_s23  ;;  %s192_s4 = int_to_ptr.hbm [resolvable:$true] %s191_s4 }
  0x1f   : > { %s182_s5 = scalar_lea.sflag [#allocation7], %s159_s29  ;;  %202 = sbr.rel (%p199_p3) target bundleno = 59 (0x3b), region = 32 }
  0x20   : > { %419 = dma.hbm_to_vmem [thread:$0]  (!%p716_p0), %s192_s4, 32, %s194_s23, %s182_s5  }
  0x21   : > { %s731_s6 = sand.u32 (!%p199_p3), 1, %s604_s15  }
  0x22   : > { %s397_s7 = sshll.u32 (!%p199_p3), %s731_s6, 3  ;;  %s205_s8 = scalar_lea.sflag (!%p199_p3), [#allocation4], %s731_s6 }
  0x23   : > { %s208_s9 = scalar_lea.vmem (!%p199_p3), [#allocation3], %s397_s7 }
  0x24   : > { %587 = dma.done.wait (%p692_p8), %s205_s8, 128  }
  0x25   : > { %589 = vsyncadd (%p692_p8), %s205_s8, 4294967168  ;;  %s398_s29 = sshll.u32 %s731_s6, 1  ;;  %s215_s10 = scalar_lea.sflag [#allocation7], %s731_s6 }
  0x26   : > { %s218_s11 = scalar_lea.vmem [#allocation6], %s398_s29 }
  0x27   : > { %591 = dma.done.wait (%p692_p8), %s215_s10, 32  }
  0x28   : > { %593 = vsyncadd (%p692_p8), %s215_s10, 4294967264  ;;  %s247_s12 = sld [smem:[#allocation2]]  ;;  %s406_s13 = sshll.u32 %s612_s17, 3  ;;  %v248_v0 = vld [vmem:[%s218_s11] sm:$0x3]  ;;  %vm256_vm0 = vcmask 1043456  }
  0x29   : > { %s275_s22 = scalar_lea.hbm %s786_s3, %s406_s13  ;;  %v251_v5 = vld [vmem:[%s208_s9] sm:$0xff]  ;;  %s246_s24 = scalar_lea.vmem [#allocation8], %s397_s7 }
  0x2a   : > { %s277_s25 = sshll.u32 %s246_s24, 4  ;;  %s279_s30 = sshll.u32 %s275_s22, 4  ;;  %s278_s25 = int_to_ptr.vmem [resolvable:$true] %s277_s25  ;;  %s280_s30 = int_to_ptr.hbm [resolvable:$true] %s279_s30 }
  0x2b   : > { %s262_s17 = scalar_lea.sflag [#allocation5], %s731_s6  ;;  %s548_s23 = sshra.s32 %s280_s30, 4  ;;  %s549_s23 = int_to_ptr.hbm [resolvable:$true] %s548_s23 }
  0x2c   : > { %s550_s4 = scalar_lea.hbm %s549_s23, 8  ;;  %s554_s9 = scalar_lea.hbm %s786_s3, 16 }
  0x2d   : > { %p551_p4 = scmp.ne.s32.totalorder %s549_s23, %s550_s4  ;;  %p555_p7 = scmp.lt.s32.totalorder %s549_s23, %s786_s3 }
  0x2e   : > { %v249_v1 = vstv %s247_s12  ;;  %p556_p8 = scmp.lt.s32.totalorder %s554_s9, %s550_s4 }
  0x2f   : > { %v250_v2 = vmul.f32 %v249_v1, %v248_v0  ;;  %p552_p5 = pnand %p551_p4, %p696_p9 }
  0x30   : > { %p557_p10 = por %p556_p8, %p555_p7 }
  0x31   : > { %v253_v3 = vperm.slane %v250_v2, 0  ;;  %v254_v4 = vperm.slane %v250_v2, 1  ;;  %p553_p6 = pneg %p552_p5 }
  0x33   : > { %v255_v6 = vrot.slane %v254_v4, 4  ;;  %p558_p13 = pnand %p557_p10, %p553_p6 }
  0x35   : > { %v257_v7 = vsel %vm256_vm0, %v253_v3, %v255_v6 }
  0x36   : > { %v259_v8 = vadd.f32 %v257_v7, %v251_v5 }
  0x38   : > { %260 = vst [vmem:[%s246_s24] sm:$0xff] %v259_v8 }
  0x39   : > { %561 = shalt.err (!%p558_p13)
}
  0x3a   : > { %411 = dma.vmem_to_hbm [thread:$0]  (%p696_p9), %s278_s25, 128, %s280_s30, %s262_s17  }
  0x3b PF: > { %s291_s6 = sand.u32 1, %s600_s14   ;;  %p421_p0 = pnand %p390_p12, %p703_p11 }
  0x3c   : > { %s292_s10 = scalar_lea.sflag [#allocation5], %s291_s6 }
  0x3d   : > { %p422_p1 = pneg %p421_p0 }
  0x3f   : > { %595 = dma.done.wait (%p422_p1), %s292_s10, 128  }
  0x40   : > { %597 = vsyncadd (%p422_p1), %s292_s10, 4294967168  ;;  %s23_s19 = sadd.s32 1, %s620_s19   ;;  %s792_s14 = smov %s604_s15 }
  0x41   : > { %p20_p2 = scmp.ge.s32.totalorder %s23_s19, 4   ;;  %s793_s15 = smov %s608_s16 }
  0x42   : > { %s794_s16 = smov %s701_s27  ;;  %s795_s17 = smov %s616_s18 }
  0x43   : > { %s796_s18 = smov %s798_s21  ;;  %22 = sbr.rel (!%p20_p2) target bundleno = 10 (0xa), region = 90 }
  0x48   :  { %298 = vsyncpa [#allocation4], 1 }
  0x49   :  { %300 = vsyncpa [#allocation4 + $0x1], 1 }
  0x4a   :  { %301 = vsyncpa [#allocation7], 1 }
  0x4b   :  { %303 = vsyncpa [#allocation7 + $0x1], 1 }
  0x4c   :  { %304 = vsyncpa [#allocation5], 1 }
  0x4d   :  { %306 = vsyncpa [#allocation5 + $0x1], 1 }

</bundles_post_ra>
